<compile_context>
chip_gen: v7x
topology: tpu7x:2x2x1
jax: 0.10.0
libtpu: 0.0.40
codegen_flags: <defaults>
</compile_context>

<pallas_src>
import jax
import jax.numpy as jnp
from jax import lax
from jax.experimental import pallas as pl
from jax.experimental.pallas import tpu as pltpu


def _pick_tile(n, target):
    """Largest tile t <= target with t | n and (t % 8 == 0 or t == n)."""
    if n <= target:
        return n
    for t in range(target, 0, -1):
        if n % t == 0 and t % 8 == 0:
            return t
    return n


# ---------------------------------------------------------------------------
# 1x1 conv == per-pixel matmul:  y[b, n, :] = x[b, n, :] @ W^T + bias
# Fused Q|V variant: W is the (Cin, 2C) concatenation, output split in the wrapper.
# ---------------------------------------------------------------------------
def _conv1x1_kernel(x_ref, w_ref, b_ref, o_ref):
    # x_ref: (1, TN, Cin), w_ref: (Cin, Cout), b_ref: (1, Cout), o_ref: (1, TN, Cout)
    x = x_ref[0].astype(jnp.bfloat16)
    w = w_ref[...].astype(jnp.bfloat16)
    y = jnp.dot(x, w, preferred_element_type=jnp.float32) + b_ref[...].astype(jnp.float32)
    o_ref[0] = y.astype(o_ref.dtype)


def conv1x1(x_bnc, w, bias, *, tile_n=512):
    """x_bnc: (B, N, Cin); w: (Cout, Cin) torch-conv layout; bias: (Cout,) -> (B, N, Cout) f32."""
    B, N, C_in = x_bnc.shape
    C_out = w.shape[0]
    TN = _pick_tile(N, tile_n)
    w_t = jnp.asarray(w).T                                  # (Cin, Cout)
    return pl.pallas_call(
        _conv1x1_kernel,
        out_shape=jax.ShapeDtypeStruct((B, N, C_out), jnp.float32),
        grid_spec=pltpu.PrefetchScalarGridSpec(
            num_scalar_prefetch=0,
            grid=(B, N // TN),
            in_specs=[pl.BlockSpec((1, TN, C_in), lambda b, n: (b, n, 0)),
                      pl.BlockSpec((C_in, C_out), lambda b, n: (0, 0)),
                      pl.BlockSpec((1, C_out), lambda b, n: (0, 0))],
            out_specs=pl.BlockSpec((1, TN, C_out), lambda b, n: (b, n, 0)),
        ),
        compiler_params=pltpu.CompilerParams(
            dimension_semantics=("parallel", "parallel")),
    )(x_bnc, w_t, bias.reshape(1, C_out))


def _conv1x1_keys_kernel(x_ref, w_ref, b_ref, o_ref):
    # x_ref: (1, 1, TN, Cin), w_ref: (1, Cin, Cout), b_ref: (1, 1, Cout), o_ref: (1, 1, TN, Cout)
    x = x_ref[0, 0].astype(jnp.bfloat16)
    w = w_ref[0].astype(jnp.bfloat16)
    y = jnp.dot(x, w, preferred_element_type=jnp.float32) + b_ref[0].astype(jnp.float32)
    o_ref[0, 0] = y.astype(o_ref.dtype)


def conv1x1_keys(x_jbnc, w_j, bias_j, *, tile_n=512):
    """All J key projections in one call.
    x: (J, B, N, Cin); w_j: (J, Cout, Cin) torch layout; bias_j: (J, Cout) -> (J, B, N, Cout) f32."""
    J, B, N, C_in = x_jbnc.shape
    C_out = w_j.shape[1]
    TN = _pick_tile(N, tile_n)
    w_t = jnp.transpose(w_j, (0, 2, 1))                     # (J, Cin, Cout)
    return pl.pallas_call(
        _conv1x1_keys_kernel,
        out_shape=jax.ShapeDtypeStruct((J, B, N, C_out), jnp.float32),
        grid_spec=pltpu.PrefetchScalarGridSpec(
            num_scalar_prefetch=0,
            grid=(J, B, N // TN),
            in_specs=[pl.BlockSpec((1, 1, TN, C_in), lambda j, b, n: (j, b, n, 0)),
                      pl.BlockSpec((1, C_in, C_out), lambda j, b, n: (j, 0, 0)),
                      pl.BlockSpec((1, 1, C_out), lambda j, b, n: (j, 0, 0))],
            out_specs=pl.BlockSpec((1, 1, TN, C_out), lambda j, b, n: (j, b, n, 0)),
        ),
        compiler_params=pltpu.CompilerParams(
            dimension_semantics=("parallel", "parallel", "parallel")),
    )(x_jbnc, w_t, bias_j.reshape(J, 1, C_out))


# ---------------------------------------------------------------------------
# Fused attention, tiled over query rows.
#   For one (batch b, query tile qi, source j):
#     energy = Q_tile @ K_j^T            (TQ, N)   bf16 MXU, f32 accumulate
#     acc   += softmax(energy, -1) @ V   (TQ, C)   accumulated over j in VMEM scratch
#   (sum_j softmax(E_j)) @ V == sum_j (softmax(E_j) @ V)  -> matches torch's
#   stack(attentions).sum(0) followed by bmm with value.
# ---------------------------------------------------------------------------
def _attention_kernel(q_ref, k_ref, v_ref, o_ref, acc_ref):
    j = pl.program_id(2)

    @pl.when(j == 0)
    def _():
        acc_ref[...] = jnp.zeros_like(acc_ref)

    q = q_ref[0].astype(jnp.bfloat16)        # (TQ, C)
    k = k_ref[0, 0].astype(jnp.bfloat16)     # (N, C)
    v = v_ref[0].astype(jnp.bfloat16)        # (N, C)

    # energy[m, n] = sum_c q[m, c] * k[n, c]
    energy = lax.dot_general(q, k, (((1,), (1,)), ((), ())),
                             preferred_element_type=jnp.float32)   # (TQ, N) f32

    m = jnp.max(energy, axis=-1, keepdims=True)
    p = jnp.exp(energy - m)                                        # (TQ, N) f32
    inv = pl.reciprocal(jnp.sum(p, axis=-1, keepdims=True), approx=True)   # (TQ, 1)

    # softmax(E_j) @ V, with the 1/row_sum folded into the small (TQ, C) result.
    contrib = jnp.dot(p.astype(jnp.bfloat16), v,
                      preferred_element_type=jnp.float32)          # (TQ, C)
    acc_ref[...] += contrib * inv

    @pl.when(j == pl.num_programs(2) - 1)
    def _():
        o_ref[0] = acc_ref[...].astype(o_ref.dtype)


def fused_attention(q, keys, v, *, tile_q=256, vmem_limit_bytes=48 * 1024 * 1024):
    """q, v: (B, N, C) f32; keys: (J, B, N, C) f32.
    Returns out (B, N, C) f32 with out[b] = sum_j softmax(q[b] @ keys[j,b].T, -1) @ v[b]."""
    B, N, C = q.shape
    J = keys.shape[0]
    TQ = _pick_tile(N, tile_q)
    return pl.pallas_call(
        _attention_kernel,
        out_shape=jax.ShapeDtypeStruct((B, N, C), jnp.float32),
        grid_spec=pltpu.PrefetchScalarGridSpec(
            num_scalar_prefetch=0,
            grid=(B, N // TQ, J),
            in_specs=[pl.BlockSpec((1, TQ, C), lambda b, qi, j: (b, qi, 0)),
                      pl.BlockSpec((1, 1, N, C), lambda b, qi, j: (j, b, 0, 0)),
                      pl.BlockSpec((1, N, C), lambda b, qi, j: (b, 0, 0))],
            out_specs=pl.BlockSpec((1, TQ, C), lambda b, qi, j: (b, qi, 0)),
            scratch_shapes=[pltpu.VMEM((TQ, C), jnp.float32)],
        ),
        compiler_params=pltpu.CompilerParams(
            dimension_semantics=("parallel", "parallel", "arbitrary"),
            vmem_limit_bytes=vmem_limit_bytes),
    )(q, keys, v)


# ---------------------------------------------------------------------------
# Module wrapper (glue in plain JAX)
# ---------------------------------------------------------------------------
def nchw_to_bnc(x):
    B, C, H, W = x.shape
    return x.transpose(0, 2, 3, 1).reshape(B, H * W, C)


class PAMModulePallas:
    def __init__(self, num, sizes, mode=None, key=None):
        self.sizes = sizes
        self.mode = mode if mode is not None else ''    # guard: torch's mode=None would crash
        C = sizes[1]
        key = jax.random.PRNGKey(0) if key is None else key
        bound = 1.0 / (C ** 0.5)
        self.params = {'query': [], 'key': [], 'value': []}
        for _ in range(num):
            for name in ('query', 'key', 'value'):
                key, kw, kb = jax.random.split(key, 3)
                w = jax.random.uniform(kw, (C, C), jnp.float32, -bound, bound)
                b = jax.random.uniform(kb, (C,), jnp.float32, -bound, bound)
                self.params[name].append((w, b))        # torch conv layout (Cout, Cin)

    def __call__(self, feat_sources, feat_targets):
        mode = self.mode

        # --- all J key projections in a single batched pallas_call ----------------
        J = len(feat_sources)
        src = jnp.stack([nchw_to_bnc(s) for s in feat_sources], axis=0)       # (J, B, N, C)
        wk = jnp.stack([self.params['key'][j][0] for j in range(J)], axis=0)  # (J, C, C)
        bk = jnp.stack([self.params['key'][j][1] for j in range(J)], axis=0)  # (J, C)
        K = conv1x1_keys(src, wk, bk)                                         # (J, B, N, C)
        k_colsum = jnp.sum(K, axis=2)                                         # (J, B, C)

        ret_feats, ret_alphas = [], []
        for i, tgt in enumerate(feat_targets):
            Bt, Ct, Ht, Wt = tgt.shape
            N = Ht * Wt
            x = nchw_to_bnc(tgt)

            # --- fused Q & V projection (one matmul on concatenated weights) ------
            wq, bq = self.params['query'][i]
            wv, bv = self.params['value'][i]
            w_qv = jnp.concatenate([wq, wv], axis=0)       # (2C, C)
            b_qv = jnp.concatenate([bq, bv], axis=0)       # (2C,)
            qv = conv1x1(x, w_qv, b_qv)                    # (B, N, 2C)
            q, v = qv[..., :Ct], qv[..., Ct:]

            # --- attention, summed over all source keys inside the kernel ---------
            out_bnc = fused_attention(q, K, v)

            # --- energy.mean() per source via the exact column-sum identity -------
            #     sum(energy_j[b]) = (sum_m q[b, m, :]) . (sum_n k_j[b, n, :])
            q_colsum = jnp.sum(q, axis=1)                                     # (B, C)
            means = jnp.einsum('bc,jbc->j', q_colsum, k_colsum) / (Bt * N * N)

            if mode.find('alpha') >= 0:
                ret_alphas.append(jax.nn.softmax(means, axis=0))
            else:
                ret_alphas.append(means.mean())

            if mode in ['all', 'pam', 'cam', 'alpha_cam', 'alpha_all']:
                out = out_bnc.reshape(Bt, Ht, Wt, Ct).transpose(0, 3, 1, 2)   # back to NCHW
                ret_feats.append(out)

        if mode.find('alpha') >= 0:
            ret_alphas = jnp.stack(ret_alphas, axis=0)
        else:
            ret_alphas = jax.nn.softmax(jnp.stack(ret_alphas), axis=0)
        return ret_feats, ret_alphas


# ---------------------------------------------------------------------------
# Pure-JAX f32 reference (mirrors the torch code) for a sanity check
# ---------------------------------------------------------------------------
def ref_forward(params, feat_sources, feat_targets, mode):
    def conv(x, w, b):      # x NCHW
        return jnp.einsum('bchw,oc->bohw', x, w) + b[None, :, None, None]

    ret_feats, ret_alphas = [], []
    for i, query in enumerate(feat_targets):
        Bt, Ct, Ht, Wt = query.shape
        wq, bq = params['query'][i]
        pq = conv(query, wq, bq).reshape(Bt, Ct, Ht * Wt).transpose(0, 2, 1)
        attns, means = [], []
        for j, key_f in enumerate(feat_sources):
            wk, bk = params['key'][j]
            pk = conv(key_f, wk, bk).reshape(Bt, Ct, Ht * Wt)
            energy = jnp.einsum('bnc,bcm->bnm', pq, pk)
            means.append(energy.mean())
            attns.append(jax.nn.softmax(energy, axis=-1))
        if mode.find('alpha') >= 0:
            ret_alphas.append(jax.nn.softmax(jnp.stack(means), axis=0))
        else:
            ret_alphas.append(jnp.stack(means).mean())
        if mode in ['all', 'pam', 'cam', 'alpha_cam', 'alpha_all']:
            attn = jnp.stack(attns, 0).sum(0)
            wv, bv = params['value'][i]
            val = conv(query, wv, bv).reshape(Bt, Ct, Ht * Wt)
            out = jnp.einsum('bcn,bmn->bcm', val, attn).reshape(Bt, Ct, Ht, Wt)
            ret_feats.append(out)
    if mode.find('alpha') >= 0:
        ret_alphas = jnp.stack(ret_alphas, 0)
    else:
        ret_alphas = jax.nn.softmax(jnp.stack(ret_alphas), axis=0)
    return ret_feats, ret_alphas


if __name__ == "__main__":
    B, C, H, W = 2, 4, 16, 16
    key = jax.random.PRNGKey(0)
    k1, k2, k3, k4, kp = jax.random.split(key, 5)
    feat_sources = [jax.random.normal(k1, (B, C, H, W), jnp.float32),
                    jax.random.normal(k2, (B, C, H, W), jnp.float32)]
    feat_targets = [jax.random.normal(k3, (B, C, H, W), jnp.float32),
                    jax.random.normal(k4, (B, C, H, W), jnp.float32)]

    module = PAMModulePallas(num=2, sizes=(B, C, H, W), mode='pam', key=kp)
    feats, alphas = module(feat_sources, feat_targets)
    feats = [jax.block_until_ready(f) for f in feats]
    alphas = jax.block_until_ready(alphas)

    # sanity check against the pure-f32 reference; kernels use bf16 MXU operands with
    # f32 accumulation, so tolerances are set accordingly.
    ref_feats, ref_alphas = ref_forward(module.params, feat_sources, feat_targets, 'pam')
    for f, rf in zip(feats, ref_feats):
        assert jnp.allclose(f, rf, atol=3e-2, rtol=3e-2), float(jnp.abs(f - rf).max())
    assert jnp.allclose(alphas, ref_alphas, atol=1e-2), (alphas, ref_alphas)

    print("KERNEL_OK")
</pallas_src>

<mosaic_0001>
module attributes {stable_mosaic.version = 11 : i64} {
  func.func @_conv1x1_keys_kernel(%arg0: i32, %arg1: i32, %arg2: i32, %arg3: memref<1x1x256x4xf32, #tpu.memory_space<vmem>>, %arg4: memref<1x4x4xf32, #tpu.memory_space<vmem>>, %arg5: memref<1x1x4xf32, #tpu.memory_space<vmem>>, %arg6: memref<1x1x256x4xf32, #tpu.memory_space<vmem>>) attributes {dimension_semantics = [#tpu.dimension_semantics<parallel>, #tpu.dimension_semantics<parallel>, #tpu.dimension_semantics<parallel>], iteration_bounds = array<i64: 2, 2, 1>, scalar_prefetch = 0 : i64, scratch_operands = 0 : i64, tpu.core_type = #tpu.core_type<tc>, window_params = [{transform_indices = @transform_0, window_bounds = array<i64: 1, 1, 256, 4>}, {transform_indices = @transform_1, window_bounds = array<i64: 1, 4, 4>}, {transform_indices = @transform_2, window_bounds = array<i64: 1, 1, 4>}, {transform_indices = @transform_3, window_bounds = array<i64: 1, 1, 256, 4>}]} {
    %c0 = arith.constant 0 : index
    %c0_0 = arith.constant 0 : index
    %c0_1 = arith.constant 0 : index
    %c0_2 = arith.constant 0 : index
    %0 = vector.load %arg3[%c0, %c0_0, %c0_1, %c0_2] : memref<1x1x256x4xf32, #tpu.memory_space<vmem>>, vector<1x1x256x4xf32>
    %1 = vector.shape_cast %0 : vector<1x1x256x4xf32> to vector<256x4xf32>
    %2 = arith.truncf %1 : vector<256x4xf32> to vector<256x4xbf16>
    %c0_3 = arith.constant 0 : index
    %c0_4 = arith.constant 0 : index
    %c0_5 = arith.constant 0 : index
    %3 = vector.load %arg4[%c0_3, %c0_4, %c0_5] : memref<1x4x4xf32, #tpu.memory_space<vmem>>, vector<1x4x4xf32>
    %4 = vector.shape_cast %3 : vector<1x4x4xf32> to vector<4x4xf32>
    %5 = arith.truncf %4 : vector<4x4xf32> to vector<4x4xbf16>
    %cst = arith.constant dense<0.000000e+00> : vector<256x4xf32>
    %6 = tpu.matmul %2, %5, %cst {dimension_numbers = #tpu.dot_dimension_numbers<[1], [0], [0], [1], [0, 0, 1, 1], [], []>} : vector<256x4xbf16>, vector<4x4xbf16>, vector<256x4xf32> -> vector<256x4xf32>
    %c0_6 = arith.constant 0 : index
    %c0_7 = arith.constant 0 : index
    %c0_8 = arith.constant 0 : index
    %7 = vector.load %arg5[%c0_6, %c0_7, %c0_8] : memref<1x1x4xf32, #tpu.memory_space<vmem>>, vector<1x1x4xf32>
    %8 = vector.shape_cast %7 : vector<1x1x4xf32> to vector<1x4xf32>
    %9 = vector.broadcast %8 : vector<1x4xf32> to vector<256x4xf32>
    %10 = arith.addf %6, %9 : vector<256x4xf32>
    %c0_9 = arith.constant 0 : index
    %c0_10 = arith.constant 0 : index
    %c0_11 = arith.constant 0 : index
    %c0_12 = arith.constant 0 : index
    %11 = vector.load %arg6[%c0_9, %c0_10, %c0_11, %c0_12] : memref<1x1x256x4xf32, #tpu.memory_space<vmem>>, vector<1x1x256x4xf32>
    %12 = vector.shape_cast %11 : vector<1x1x256x4xf32> to vector<256x4xf32>
    %13 = vector.shape_cast %10 : vector<256x4xf32> to vector<1x1x256x4xf32>
    tpu.vector_store %arg6[%c0_9, %c0_10, %c0_11, %c0_12], %13 {strides = array<i32>} : memref<1x1x256x4xf32, #tpu.memory_space<vmem>>, vector<1x1x256x4xf32>,
    return
  }
  func.func @transform_0(%arg0: i32, %arg1: i32, %arg2: i32) -> (i32, i32, i32, i32) {
    %c0_i32 = arith.constant 0 : i32
    %c0_i32_0 = arith.constant 0 : i32
    return %arg0, %arg1, %arg2, %c0_i32 : i32, i32, i32, i32
  }
  func.func @transform_1(%arg0: i32, %arg1: i32, %arg2: i32) -> (i32, i32, i32) {
    %c0_i32 = arith.constant 0 : i32
    %c0_i32_0 = arith.constant 0 : i32
    %c0_i32_1 = arith.constant 0 : i32
    return %arg0, %c0_i32, %c0_i32_0 : i32, i32, i32
  }
  func.func @transform_2(%arg0: i32, %arg1: i32, %arg2: i32) -> (i32, i32, i32) {
    %c0_i32 = arith.constant 0 : i32
    %c0_i32_0 = arith.constant 0 : i32
    %c0_i32_1 = arith.constant 0 : i32
    return %arg0, %c0_i32, %c0_i32_0 : i32, i32, i32
  }
  func.func @transform_3(%arg0: i32, %arg1: i32, %arg2: i32) -> (i32, i32, i32, i32) {
    %c0_i32 = arith.constant 0 : i32
    %c0_i32_0 = arith.constant 0 : i32
    return %arg0, %arg1, %arg2, %c0_i32 : i32, i32, i32, i32
  }
}

</mosaic_0001>

<bundles_post_ra>
// kernel: tpu_custom_call.1
= control target key start
LH: loop header
LB: loop body
LE: loop exit
PB: predicated region body
PF: predicated region fallthrough
CT: control target
= control target key end

     0   :  { %s898_s12 = smov 0   ;;  %s900_s13 = smov 0   ;;  %s1117_s0 = inlined_call_operand.vmem [shape: f32[2,2,256,4], index: 0, kind: input, shape index: {}]   ;;  %s1118_s1 = inlined_call_operand.vmem [shape: f32[2,4,4], index: 1, kind: input, shape index: {}]   ;;  %s1119_s2 = inlined_call_operand.vmem [shape: f32[2,1,4], index: 2, kind: input, shape index: {}]   ;;  %s1120_s3 = inlined_call_operand.vmem [shape: f32[2,2,256,4], index: 3, kind: output, shape index: {}]  }
   0x1   :  { %s902_s14 = smov 0   ;;  %s904_s15 = smov 0  }
   0x2   :  { %s906_s16 = smov 0  }
   0x3 LB: > { %s28_s17 = sadd.s32 1, %s868_s14  ;;  %s32_s18 = sadd.s32 1, %s872_s15  ;;  %s876_s16 = sphi %s906_s16, %s13_s16   ;;  %s872_s15 = sphi %s904_s15, %s1124_s15   ;;  %s868_s14 = sphi %s902_s14, %s1123_s14   ;;  %s864_s13 = sphi %s900_s13, %s1122_s13   ;;  %s860_s12 = sphi %s898_s12, %s1121_s12  }
   0x4   : > { %p30_p0 = scmp.ge.s32.totalorder %s28_s17, 2  ;;  %p716_p1 = scmp.ge.s32.totalorder %s876_s16, 1 }
   0x5   : > { %p190_p2 = scmp.lt.s32.totalorder %s876_s16, 5 }
   0x6   : > { %s1126_s17 = smov (%p30_p0, %s28_s17), 0  ;;  %s1128_s18 = smov (!%p30_p0, %s32_s18), %s872_s15 }
   0x7   : > { %p191_p3 = pnand %p716_p1, %p190_p2  ;;  %p34_p4 = scmp.ge.s32.totalorder %s1128_s18, 2 }
   0x8   : > { %p238_p5 = scmp.lt.s32.totalorder (!%p191_p3), %s864_s13, 1  ;;  %p240_p6 = scmp.lt.s32.totalorder (!%p191_p3), %s860_s12, 1  ;;  %vm379_vm0 = vcmask (!%p191_p3), 1041408   ;;  %vm330_vm1 = vcmask (!%p191_p3), 31744  }
   0x9   : > { %s1130_s18 = smov (%p34_p4, %s1128_s18), 0  ;;  %194 = sbr.rel (%p191_p3) target bundleno = 269 (0x10d), region = 32 }
  0x10   : > { %s1132_s13 = smov (!%p238_p5, %s864_s13), 1  ;;  %s1134_s12 = smov (!%p240_p6, %s860_s12), 1 }
  0x11   : > { %s718_s19 = sshll.u32 %s1132_s13, 6  ;;  %s720_s20 = sshll.u32 %s1132_s13, 2 }
  0x12   : > { %s717_s21 = sshll.u32 %s1134_s12, 5  ;;  %s254_s24 = scalar_lea.vmem %s1118_s1, %s720_s20 }
  0x13   : > { %s935_s25 = sadd.s32 %s718_s19, %s717_s21  ;;  %v321_v0 = vld [vmem:[%s254_s24] sm:$0xf]  ;;  %s257_s5 = scalar_lea.vmem %s1119_s2, %s1132_s13 }
  0x14   : > { %s719_s26 = sshll.u32 %s935_s25, 3  ;;  %v322_v1 = vpack.c.bf16 %v321_v0, %v321_v0  ;;  %v997_v51 = vld [vmem:[%s257_s5] ss:$0 sm:$0xff] }
  0x15   : > { %s943_s29 = scalar_lea.vmem %s1117_s0, %s719_s26  ;;  %s1004_s8 = scalar_lea.vmem %s1120_s3, %s719_s26 }
  0x16   : > { %796 = vmatprep.subr.msk.bf16.mxu0 %vm379_vm0, %v322_v1  ;;  %797 = vmatprep.subr.msk.bf16.mxu1 %vm379_vm0, %v322_v1  ;;  %v381_v2 = vsel %vm379_vm0, %v322_v1, 0  ;;  %v273_v3 = vld [vmem:[%s943_s29] sm:$0xff]  ;;  %v274_v4 = vld [vmem:[%s943_s29 + $0x8] sm:$0xff]  ;;  %v275_v8 = vld [vmem:[%s943_s29 + $0x10] sm:$0xff] }
  0x17   : > { %v289_v5 = vld [vmem:[%s943_s29 + $0x80] sm:$0xff]  ;;  %761 = vmatpush3.bf16.msra.mxu0 %v381_v2  ;;  %795 = vmatpush3.bf16.msra.mxu1 %v381_v2  ;;  %v305_v6 = vpack.c.bf16 %v274_v4, %v273_v3  ;;  %v290_v7 = vld [vmem:[%s943_s29 + $0x88] sm:$0xff]  ;;  %v276_v9 = vld [vmem:[%s943_s29 + $0x18] sm:$0xff] }
  0x18   : > { %v313_v10 = vpack.c.bf16 %v290_v7, %v289_v5  ;;  %v306_v11 = vpack.c.bf16 %v276_v9, %v275_v8  ;;  %v291_v12 = vld [vmem:[%s943_s29 + $0x90] sm:$0xff]  ;;  %v292_v13 = vld [vmem:[%s943_s29 + $0x98] sm:$0xff]  ;;  %v277_v14 = vld [vmem:[%s943_s29 + $0x20] sm:$0xff] }
  0x19   : > { %762 = vmatprep.mubr.msk.bf16.mxu0 %vm330_vm1, %v305_v6  ;;  %v314_v15 = vpack.c.bf16 %v292_v13, %v291_v12  ;;  %v278_v16 = vld [vmem:[%s943_s29 + $0x28] sm:$0xff]  ;;  %v293_v17 = vld [vmem:[%s943_s29 + $0xa0] sm:$0xff]  ;;  %v279_v21 = vld [vmem:[%s943_s29 + $0x30] sm:$0xff] }
  0x1a   : > { %v294_v18 = vld [vmem:[%s943_s29 + $0xa8] sm:$0xff]  ;;  %778 = vmatprep.mubr.msk.bf16.mxu1 %vm330_vm1, %v313_v10  ;;  %763 = vmatmul.mubr.msk.bf16.vlgmr.msra.gmra.mrb[0].mxu0 %vm330_vm1, %v306_v11  ;;  %v307_v19 = vpack.c.bf16 %v278_v16, %v277_v14  ;;  %v280_v22 = vld [vmem:[%s943_s29 + $0x38] sm:$0xff]  ;;  %v295_v23 = vld [vmem:[%s943_s29 + $0xb0] sm:$0xff] }
  0x1b   : > { %v315_v20 = vpack.c.bf16 %v294_v18, %v293_v17  ;;  %779 = vmatmul.mubr.msk.bf16.vlgmr.msra.gmra.mrb[0].mxu1 %vm330_vm1, %v314_v15  ;;  %v296_v24 = vld [vmem:[%s943_s29 + $0xb8] sm:$0xff]  ;;  %v281_v25 = vld [vmem:[%s943_s29 + $0x40] sm:$0xff]  ;;  %v282_v26 = vld [vmem:[%s943_s29 + $0x48] sm:$0xff]  ;;  %v308_v29 = vpack.c.bf16 %v280_v22, %v279_v21 }
  0x1c   : > { %766 = vmatprep.mubr.msk.bf16.mxu0 %vm330_vm1, %v307_v19  ;;  %v297_v27 = vld [vmem:[%s943_s29 + $0xc0] sm:$0xff]  ;;  %v298_v28 = vld [vmem:[%s943_s29 + $0xc8] sm:$0xff]  ;;  %v316_v30 = vpack.c.bf16 %v296_v24, %v295_v23  ;;  %v309_v31 = vpack.c.bf16 %v282_v26, %v281_v25  ;;  %v283_v33 = vld [vmem:[%s943_s29 + $0x50] sm:$0xff] }
  0x1d   : > { %782 = vmatprep.mubr.msk.bf16.mxu1 %vm330_vm1, %v315_v20  ;;  %v317_v32 = vpack.c.bf16 %v298_v28, %v297_v27  ;;  %v284_v34 = vld [vmem:[%s943_s29 + $0x58] sm:$0xff]  ;;  %v299_v35 = vld [vmem:[%s943_s29 + $0xd0] sm:$0xff]  ;;  %v285_v37 = vld [vmem:[%s943_s29 + $0x60] sm:$0xff] }
  0x1e   : > { %v300_v36 = vld [vmem:[%s943_s29 + $0xd8] sm:$0xff]  ;;  %v286_v38 = vld [vmem:[%s943_s29 + $0x68] sm:$0xff]  ;;  %v301_v39 = vld [vmem:[%s943_s29 + $0xe0] sm:$0xff]  ;;  %v310_v41 = vpack.c.bf16 %v284_v34, %v283_v33 }
  0x1f   : > { %v302_v40 = vld [vmem:[%s943_s29 + $0xe8] sm:$0xff]  ;;  %v318_v42 = vpack.c.bf16 %v300_v36, %v299_v35  ;;  %v311_v43 = vpack.c.bf16 %v286_v38, %v285_v37  ;;  %v287_v45 = vld [vmem:[%s943_s29 + $0x70] sm:$0xff]  ;;  %v288_v46 = vld [vmem:[%s943_s29 + $0x78] sm:$0xff] }
  0x20   : > { %v319_v44 = vpack.c.bf16 %v302_v40, %v301_v39  ;;  %v303_v47 = vld [vmem:[%s943_s29 + $0xf0] sm:$0xff]  ;;  %v304_v48 = vld [vmem:[%s943_s29 + $0xf8] sm:$0xff]  ;;  %v312_v49 = vpack.c.bf16 %v288_v46, %v287_v45 }
  0x21   : > { %v320_v50 = vpack.c.bf16 %v304_v48, %v303_v47 }
  0x22   : > { %767 = vmatmul.mubr.msk.bf16.gmra.mrb[4].mxu0 %vm330_vm1, %v308_v29 }
  0x23   : > { %783 = vmatmul.mubr.msk.bf16.gmra.mrb[4].mxu1 %vm330_vm1, %v316_v30  ;;  %770 = vmatprep.mubr.msk.bf16.mxu0 %vm330_vm1, %v309_v31 }
  0x24   : > { %786 = vmatprep.mubr.msk.bf16.mxu1 %vm330_vm1, %v317_v32 }
  0x2a   : > { %771 = vmatmul.mubr.msk.bf16.gmra.mrb[8].mxu0 %vm330_vm1, %v310_v41 }
  0x2b   : > { %787 = vmatmul.mubr.msk.bf16.gmra.mrb[8].mxu1 %vm330_vm1, %v318_v42  ;;  %774 = vmatprep.mubr.msk.bf16.mxu0 %vm330_vm1, %v311_v43 }
  0x2c   : > { %790 = vmatprep.mubr.msk.bf16.mxu1 %vm330_vm1, %v319_v44 }
  0x32   : > { %775 = vmatmul.mubr.msk.bf16.gmra.mrb[12].mxu0 %vm330_vm1, %v312_v49 }
  0x33   : > { %791 = vmatmul.mubr.msk.bf16.gmra.mrb[12].mxu1 %vm330_vm1, %v320_v50 }
  0xed   : > { %v764_v52 = vpop.f32.mrb[0].mxu0 }
  0xee   : > { %v426_v53 = vadd.f32 %v764_v52, %v997_v51  ;;  %v780_v54 = vpop.f32.mrb[0].mxu1  ;;  %v417_v55 = vpop.f32.mrb[1].mxu0 }
  0xef   : > { %v490_v56 = vadd.f32 %v780_v54, %v997_v51  ;;  %v418_v57 = vadd.f32 %v997_v51, %v417_v55  ;;  %v481_v58 = vpop.f32.mrb[1].mxu1  ;;  %v765_v59 = vpop.f32.mrb[2].mxu0 }
  0xf0   : > { %546 = vst.msk [vmem:[%s1004_s8 + $0x10] sm:$0xff] %vm330_vm1, %v426_v53  ;;  %v482_v60 = vadd.f32 %v997_v51, %v481_v58  ;;  %v429_v61 = vadd.f32 %v765_v59, %v997_v51  ;;  %v781_v62 = vpop.f32.mrb[2].mxu1  ;;  %v420_v63 = vpop.f32.mrb[3].mxu0 }
  0xf1   : > { %562 = vst.msk [vmem:[%s1004_s8 + $0x90] sm:$0xff] %vm330_vm1, %v490_v56  ;;  %544 = vst.msk [vmem:[%s1004_s8] sm:$0xff] %vm330_vm1, %v418_v57  ;;  %v493_v0 = vadd.f32 %v781_v62, %v997_v51  ;;  %v421_v1 = vadd.f32 %v997_v51, %v420_v63  ;;  %v484_v2 = vpop.f32.mrb[3].mxu1 }
  0xf2   : > { %560 = vst.msk [vmem:[%s1004_s8 + $0x80] sm:$0xff] %vm330_vm1, %v482_v60  ;;  %547 = vst.msk [vmem:[%s1004_s8 + $0x18] sm:$0xff] %vm330_vm1, %v429_v61  ;;  %v485_v3 = vadd.f32 %v997_v51, %v484_v2 }
  0xf3   : > { %563 = vst.msk [vmem:[%s1004_s8 + $0x98] sm:$0xff] %vm330_vm1, %v493_v0  ;;  %545 = vst.msk [vmem:[%s1004_s8 + $0x8] sm:$0xff] %vm330_vm1, %v421_v1 }
  0xf4   : > { %561 = vst.msk [vmem:[%s1004_s8 + $0x88] sm:$0xff] %vm330_vm1, %v485_v3 }
  0xf5   : > { %v768_v4 = vpop.f32.mrb[4].mxu0 }
  0xf6   : > { %v442_v5 = vadd.f32 %v768_v4, %v997_v51  ;;  %v784_v6 = vpop.f32.mrb[4].mxu1  ;;  %v433_v7 = vpop.f32.mrb[5].mxu0 }
  0xf7   : > { %v506_v8 = vadd.f32 %v784_v6, %v997_v51  ;;  %v434_v9 = vadd.f32 %v997_v51, %v433_v7  ;;  %v497_v10 = vpop.f32.mrb[5].mxu1  ;;  %v769_v11 = vpop.f32.mrb[6].mxu0 }
  0xf8   : > { %550 = vst.msk [vmem:[%s1004_s8 + $0x30] sm:$0xff] %vm330_vm1, %v442_v5  ;;  %v498_v12 = vadd.f32 %v997_v51, %v497_v10  ;;  %v445_v13 = vadd.f32 %v769_v11, %v997_v51  ;;  %v785_v14 = vpop.f32.mrb[6].mxu1  ;;  %v436_v15 = vpop.f32.mrb[7].mxu0 }
  0xf9   : > { %566 = vst.msk [vmem:[%s1004_s8 + $0xb0] sm:$0xff] %vm330_vm1, %v506_v8  ;;  %548 = vst.msk [vmem:[%s1004_s8 + $0x20] sm:$0xff] %vm330_vm1, %v434_v9  ;;  %v509_v16 = vadd.f32 %v785_v14, %v997_v51  ;;  %v437_v17 = vadd.f32 %v997_v51, %v436_v15  ;;  %v500_v18 = vpop.f32.mrb[7].mxu1 }
  0xfa   : > { %564 = vst.msk [vmem:[%s1004_s8 + $0xa0] sm:$0xff] %vm330_vm1, %v498_v12  ;;  %551 = vst.msk [vmem:[%s1004_s8 + $0x38] sm:$0xff] %vm330_vm1, %v445_v13  ;;  %v501_v19 = vadd.f32 %v997_v51, %v500_v18 }
  0xfb   : > { %567 = vst.msk [vmem:[%s1004_s8 + $0xb8] sm:$0xff] %vm330_vm1, %v509_v16  ;;  %549 = vst.msk [vmem:[%s1004_s8 + $0x28] sm:$0xff] %vm330_vm1, %v437_v17 }
  0xfc   : > { %565 = vst.msk [vmem:[%s1004_s8 + $0xa8] sm:$0xff] %vm330_vm1, %v501_v19 }
  0xfd   : > { %v772_v20 = vpop.f32.mrb[8].mxu0 }
  0xfe   : > { %v458_v21 = vadd.f32 %v772_v20, %v997_v51  ;;  %v788_v22 = vpop.f32.mrb[8].mxu1  ;;  %v449_v23 = vpop.f32.mrb[9].mxu0 }
  0xff   : > { %v522_v24 = vadd.f32 %v788_v22, %v997_v51  ;;  %v450_v25 = vadd.f32 %v997_v51, %v449_v23  ;;  %v513_v26 = vpop.f32.mrb[9].mxu1  ;;  %v773_v27 = vpop.f32.mrb[10].mxu0 }
 0x100   : > { %554 = vst.msk [vmem:[%s1004_s8 + $0x50] sm:$0xff] %vm330_vm1, %v458_v21  ;;  %v514_v28 = vadd.f32 %v997_v51, %v513_v26  ;;  %v461_v29 = vadd.f32 %v773_v27, %v997_v51  ;;  %v789_v30 = vpop.f32.mrb[10].mxu1  ;;  %v452_v31 = vpop.f32.mrb[11].mxu0 }
 0x101   : > { %570 = vst.msk [vmem:[%s1004_s8 + $0xd0] sm:$0xff] %vm330_vm1, %v522_v24  ;;  %552 = vst.msk [vmem:[%s1004_s8 + $0x40] sm:$0xff] %vm330_vm1, %v450_v25  ;;  %v525_v32 = vadd.f32 %v789_v30, %v997_v51  ;;  %v453_v33 = vadd.f32 %v997_v51, %v452_v31  ;;  %v516_v34 = vpop.f32.mrb[11].mxu1 }
 0x102   : > { %568 = vst.msk [vmem:[%s1004_s8 + $0xc0] sm:$0xff] %vm330_vm1, %v514_v28  ;;  %555 = vst.msk [vmem:[%s1004_s8 + $0x58] sm:$0xff] %vm330_vm1, %v461_v29  ;;  %v517_v35 = vadd.f32 %v997_v51, %v516_v34 }
 0x103   : > { %571 = vst.msk [vmem:[%s1004_s8 + $0xd8] sm:$0xff] %vm330_vm1, %v525_v32  ;;  %553 = vst.msk [vmem:[%s1004_s8 + $0x48] sm:$0xff] %vm330_vm1, %v453_v33 }
 0x104   : > { %569 = vst.msk [vmem:[%s1004_s8 + $0xc8] sm:$0xff] %vm330_vm1, %v517_v35 }
 0x105   : > { %v776_v36 = vpop.f32.mrb[12].mxu0 }
 0x106   : > { %v474_v37 = vadd.f32 %v776_v36, %v997_v51  ;;  %v792_v38 = vpop.f32.mrb[12].mxu1  ;;  %v465_v39 = vpop.f32.mrb[13].mxu0 }
 0x107   : > { %v538_v40 = vadd.f32 %v792_v38, %v997_v51  ;;  %v466_v41 = vadd.f32 %v997_v51, %v465_v39  ;;  %v529_v42 = vpop.f32.mrb[13].mxu1  ;;  %v777_v43 = vpop.f32.mrb[14].mxu0 }
 0x108   : > { %558 = vst.msk [vmem:[%s1004_s8 + $0x70] sm:$0xff] %vm330_vm1, %v474_v37  ;;  %v530_v44 = vadd.f32 %v997_v51, %v529_v42  ;;  %v477_v45 = vadd.f32 %v777_v43, %v997_v51  ;;  %v793_v46 = vpop.f32.mrb[14].mxu1  ;;  %v468_v47 = vpop.f32.mrb[15].mxu0 }
 0x109   : > { %574 = vst.msk [vmem:[%s1004_s8 + $0xf0] sm:$0xff] %vm330_vm1, %v538_v40  ;;  %556 = vst.msk [vmem:[%s1004_s8 + $0x60] sm:$0xff] %vm330_vm1, %v466_v41  ;;  %v541_v48 = vadd.f32 %v793_v46, %v997_v51  ;;  %v469_v49 = vadd.f32 %v997_v51, %v468_v47  ;;  %v532_v50 = vpop.f32.mrb[15].mxu1 }
 0x10a   : > { %572 = vst.msk [vmem:[%s1004_s8 + $0xe0] sm:$0xff] %vm330_vm1, %v530_v44  ;;  %559 = vst.msk [vmem:[%s1004_s8 + $0x78] sm:$0xff] %vm330_vm1, %v477_v45  ;;  %v533_v52 = vadd.f32 %v997_v51, %v532_v50 }
 0x10b   : > { %575 = vst.msk [vmem:[%s1004_s8 + $0xf8] sm:$0xff] %vm330_vm1, %v541_v48  ;;  %557 = vst.msk [vmem:[%s1004_s8 + $0x68] sm:$0xff] %vm330_vm1, %v469_v49 }
 0x10c   : > { %573 = vst.msk [vmem:[%s1004_s8 + $0xe8] sm:$0xff] %vm330_vm1, %v533_v52 }
 0x10d PF: > { %s13_s16 = sadd.s32 1, %s876_s16   ;;  %s1121_s12 = smov %s868_s14 }
 0x10e   : > { %p10_p7 = scmp.ge.s32.totalorder %s13_s16, 6   ;;  %s1122_s13 = smov %s872_s15 }
 0x10f   : > { %s1123_s14 = smov %s1126_s17  ;;  %s1124_s15 = smov %s1130_s18 }
 0x110   :  { %12 = sbr.rel (!%p10_p7) target bundleno = 3 (0x3), region = 68 }

</bundles_post_ra>
